<compile_context>
chip_gen: v7x
topology: tpu7x:2x2x1
jax: 0.10.0
libtpu: 0.0.40
codegen_flags: <defaults>
</compile_context>

<pallas_src>
import functools

import jax
import jax.numpy as jnp
from jax import lax
from jax.experimental import pallas as pl
from jax.experimental.pallas import tpu as pltpu


# ----------------------------------------------------------------------------
# Kernel 1: bilinear 2x upsample (align_corners=True) as two small matmuls.
# ----------------------------------------------------------------------------
def _interp_matrix(out_size: int, in_size: int):
    """M such that M @ v == 1-D linear interpolation of v (align_corners=True)."""
    if in_size == 1:
        return jnp.ones((out_size, 1), jnp.float32)
    src = jnp.arange(out_size, dtype=jnp.float32) * (in_size - 1) / (out_size - 1)
    lo = jnp.clip(jnp.floor(src), 0.0, in_size - 2.0)
    frac = (src - lo)[:, None]
    lo = lo[:, None]
    cols = jnp.arange(in_size, dtype=jnp.float32)[None, :]
    return ((cols == lo) * (1.0 - frac) + (cols == lo + 1.0) * frac).astype(jnp.float32)


def _bilinear_up_kernel(x_ref, ah_ref, awt_ref, o_ref):
    # x_ref: [C, H, W]; ah_ref: [2H, H]; awt_ref: [W, 2W]; o_ref: [C, 2H, 2W]
    ah = ah_ref[...]
    awt = awt_ref[...]
    for c in range(x_ref.shape[0]):
        t = jnp.dot(ah, x_ref[c], preferred_element_type=jnp.float32)
        o_ref[c] = jnp.dot(t, awt, preferred_element_type=jnp.float32).astype(o_ref.dtype)


def bilinear_upsample_2x(x):
    """nn.Upsample(scale_factor=2, mode='bilinear', align_corners=True), NCHW."""
    N, C, H, W = x.shape
    H2, W2 = 2 * H, 2 * W
    ah = _interp_matrix(H2, H)        # [H2, H]
    awt = _interp_matrix(W2, W).T     # [W, W2]
    return pl.pallas_call(
        _bilinear_up_kernel,
        out_shape=jax.ShapeDtypeStruct((N, C, H2, W2), x.dtype),
        grid=(N,),
        in_specs=[
            pl.BlockSpec((None, C, H, W), lambda n: (n, 0, 0, 0)),
            pl.BlockSpec((H2, H), lambda n: (0, 0)),
            pl.BlockSpec((W, W2), lambda n: (0, 0)),
        ],
        out_specs=pl.BlockSpec((None, C, H2, W2), lambda n: (n, 0, 0, 0)),
        compiler_params=pltpu.CompilerParams(dimension_semantics=("parallel",)),
    )(x, ah, awt)


# ----------------------------------------------------------------------------
# Kernel 2: fused concat + ResBlock (conv3x3+BN+ReLU, conv3x3+BN+ReLU,
#           conv1x1 residual, add, ReLU) on [C, H*W] lane-flattened tiles.
# ----------------------------------------------------------------------------
def _resblock_kernel(x2_ref, x1_ref, w1a_ref, w1b_ref, s1_ref, t1_ref,
                     w2_ref, s2_ref, t2_ref, wra_ref, wrb_ref, br_ref,
                     o_ref, *, H, W):
    HW = H * W
    xa = x2_ref[...].astype(jnp.float32)   # skip-connection channels (first in concat)
    xb = x1_ref[...].astype(jnp.float32)   # upsampled channels (second in concat)

    pos = lax.broadcasted_iota(jnp.int32, (1, HW), 1)
    h_pos = pos // W
    w_pos = pos % W

    def shift2d(x, dh, dw):
        # shifted[:, h*W + w] == x[:, (h+dh)*W + (w+dw)] when in-bounds, else 0
        # == the (dh, dw) tap of a 3x3 conv with zero padding of 1.
        s = dh * W + dw
        if s != 0:
            x = pltpu.roll(x, shift=(-s) % HW, axis=1)
        conds = []
        if dh < 0:
            conds.append(h_pos >= -dh)
        elif dh > 0:
            conds.append(h_pos < H - dh)
        if dw < 0:
            conds.append(w_pos >= -dw)
        elif dw > 0:
            conds.append(w_pos < W - dw)
        if not conds:
            return x
        valid = conds[0]
        for c in conds[1:]:
            valid = jnp.logical_and(valid, c)
        return jnp.where(valid, x, 0.0)

    def conv3x3(inputs_and_weights):
        # inputs_and_weights: list of (x [C, HW], w_ref [9, C_out, C]) channel
        # groups whose contributions are summed (== conv over the concatenation).
        acc = None
        tap = 0
        for dh in (-1, 0, 1):
            for dw in (-1, 0, 1):
                for x, w_ref in inputs_and_weights:
                    term = jnp.dot(w_ref[tap], shift2d(x, dh, dw),
                                   preferred_element_type=jnp.float32)
                    acc = term if acc is None else acc + term
                tap += 1
        return acc

    # layers[0:3]: conv3x3(cat[x2, x1]) -> BN (folded) -> ReLU
    a1 = conv3x3([(xa, w1a_ref), (xb, w1b_ref)])
    h1 = jnp.maximum(a1 * s1_ref[...] + t1_ref[...], 0.0)

    # layers[3:6]: conv3x3 -> BN (folded) -> ReLU
    a2 = conv3x3([(h1, w2_ref)])
    h2 = jnp.maximum(a2 * s2_ref[...] + t2_ref[...], 0.0)

    # residual = conv1x1(cat[x2, x1]) (bias, no BN)
    res = (jnp.dot(wra_ref[...], xa, preferred_element_type=jnp.float32)
           + jnp.dot(wrb_ref[...], xb, preferred_element_type=jnp.float32)
           + br_ref[...])

    o_ref[...] = jnp.maximum(res + h2, 0.0).astype(o_ref.dtype)


def upconv_block_forward(x1, x2, p, eps=1e-5):
    """UpConvBlock.forward: bilinear-up(x1) -> pad -> cat([x2, x1]) -> ResBlock."""
    # --- upsample (Pallas kernel 1) ---
    x1u = bilinear_upsample_2x(x1)

    # --- F.pad to match x2's spatial size ---
    diffY = x2.shape[2] - x1u.shape[2]
    diffX = x2.shape[3] - x1u.shape[3]
    x1u = jnp.pad(x1u, ((0, 0), (0, 0),
                        (diffY // 2, diffY - diffY // 2),
                        (diffX // 2, diffX - diffX // 2)))

    N, C2c, H, W = x2.shape
    C1c = x1u.shape[1]
    HW = H * W
    C_out = p["conv1_w"].shape[0]

    # Free, contiguous reshapes NCHW -> NC(HW); no transposes, no extra HBM traffic.
    x2f = x2.reshape(N, C2c, HW)
    x1f = x1u.reshape(N, C1c, HW)

    # Per-tap conv weights (tap = kh*3 + kw), split into the [x2 | x1] channel groups
    # so the concatenation never has to be materialized.
    C_in = C2c + C1c
    w1t = jnp.transpose(p["conv1_w"], (2, 3, 0, 1)).reshape(9, C_out, C_in)
    w2t = jnp.transpose(p["conv2_w"], (2, 3, 0, 1)).reshape(9, C_out, C_out)
    w1a, w1b = w1t[:, :, :C2c], w1t[:, :, C2c:]
    wr = p["conv1x1_w"].reshape(C_out, C_in)
    wra, wrb = wr[:, :C2c], wr[:, C2c:]
    br = p["conv1x1_b"].reshape(C_out, 1)

    # Fold conv bias + inference-mode BatchNorm into per-channel scale/shift.
    s1 = (p["bn1_g"] / jnp.sqrt(p["bn1_v"] + eps)).reshape(C_out, 1)
    t1 = (p["bn1_b"] + (p["conv1_b"] - p["bn1_m"]) * s1.reshape(-1)).reshape(C_out, 1)
    s2 = (p["bn2_g"] / jnp.sqrt(p["bn2_v"] + eps)).reshape(C_out, 1)
    t2 = (p["bn2_b"] + (p["conv2_b"] - p["bn2_m"]) * s2.reshape(-1)).reshape(C_out, 1)

    kernel = functools.partial(_resblock_kernel, H=H, W=W)
    yf = pl.pallas_call(
        kernel,
        out_shape=jax.ShapeDtypeStruct((N, C_out, HW), x2.dtype),
        grid=(N,),
        in_specs=[
            pl.BlockSpec((None, C2c, HW), lambda n: (n, 0, 0)),
            pl.BlockSpec((None, C1c, HW), lambda n: (n, 0, 0)),
            pl.BlockSpec((9, C_out, C2c), lambda n: (0, 0, 0)),
            pl.BlockSpec((9, C_out, C1c), lambda n: (0, 0, 0)),
            pl.BlockSpec((C_out, 1), lambda n: (0, 0)),
            pl.BlockSpec((C_out, 1), lambda n: (0, 0)),
            pl.BlockSpec((9, C_out, C_out), lambda n: (0, 0, 0)),
            pl.BlockSpec((C_out, 1), lambda n: (0, 0)),
            pl.BlockSpec((C_out, 1), lambda n: (0, 0)),
            pl.BlockSpec((C_out, C2c), lambda n: (0, 0)),
            pl.BlockSpec((C_out, C1c), lambda n: (0, 0)),
            pl.BlockSpec((C_out, 1), lambda n: (0, 0)),
        ],
        out_specs=pl.BlockSpec((None, C_out, HW), lambda n: (n, 0, 0)),
        compiler_params=pltpu.CompilerParams(dimension_semantics=("parallel",)),
    )(x2f, x1f, w1a, w1b, s1, t1, w2t, s2, t2, wra, wrb, br)

    return yf.reshape(N, C_out, H, W)   # already NCHW


# ----------------------------------------------------------------------------
# Pure-JAX reference (same semantics: bilinear up, pad, concat, ResBlock, eval BN)
# ----------------------------------------------------------------------------
def upconv_block_reference(x1, x2, p, eps=1e-5):
    _, _, H1, W1 = x1.shape
    ah = _interp_matrix(2 * H1, H1)
    aw = _interp_matrix(2 * W1, W1)
    x1u = jnp.einsum("ij,ncjw->nciw", ah, x1)
    x1u = jnp.einsum("nchj,wj->nchw", x1u, aw)
    diffY = x2.shape[2] - x1u.shape[2]
    diffX = x2.shape[3] - x1u.shape[3]
    x1u = jnp.pad(x1u, ((0, 0), (0, 0),
                        (diffY // 2, diffY - diffY // 2),
                        (diffX // 2, diffX - diffX // 2)))
    x = jnp.concatenate([x2, x1u], axis=1)

    def conv(z, w, b, pad):
        out = lax.conv_general_dilated(
            z, w, window_strides=(1, 1), padding=((pad, pad), (pad, pad)),
            dimension_numbers=("NCHW", "OIHW", "NCHW"))
        return out + b.reshape(1, -1, 1, 1)

    def bn(z, g, b, m, v):
        return (g.reshape(1, -1, 1, 1) * (z - m.reshape(1, -1, 1, 1))
                / jnp.sqrt(v.reshape(1, -1, 1, 1) + eps) + b.reshape(1, -1, 1, 1))

    h = jax.nn.relu(bn(conv(x, p["conv1_w"], p["conv1_b"], 1),
                       p["bn1_g"], p["bn1_b"], p["bn1_m"], p["bn1_v"]))
    h = jax.nn.relu(bn(conv(h, p["conv2_w"], p["conv2_b"], 1),
                       p["bn2_g"], p["bn2_b"], p["bn2_m"], p["bn2_v"]))
    res = conv(x, p["conv1x1_w"], p["conv1x1_b"], 0)
    return jax.nn.relu(res + h)


if __name__ == "__main__":
    key = jax.random.PRNGKey(0)
    ks = jax.random.split(key, 16)

    N = 2
    in_channels = 8          # channels after concatenation
    out_channels = 4
    C1 = in_channels // 2    # channels of x1 (decoder path, gets upsampled)
    C2 = in_channels - C1    # channels of x2 (skip connection)
    H1 = W1 = 8
    H2s = W2s = 16

    x1 = jax.random.normal(ks[0], (N, C1, H1, W1), jnp.float32)
    x2 = jax.random.normal(ks[1], (N, C2, H2s, W2s), jnp.float32)

    def conv_init(k, shape, fan_in):
        bound = float(fan_in) ** -0.5
        return jax.random.uniform(k, shape, jnp.float32, -bound, bound)

    params = {
        # ResBlock.layers[0]: Conv2d(in, out, 3, padding=1) + BatchNorm2d(out)
        "conv1_w": conv_init(ks[2], (out_channels, in_channels, 3, 3), in_channels * 9),
        "conv1_b": conv_init(ks[3], (out_channels,), in_channels * 9),
        "bn1_g": 1.0 + 0.1 * jax.random.normal(ks[4], (out_channels,), jnp.float32),
        "bn1_b": 0.1 * jax.random.normal(ks[5], (out_channels,), jnp.float32),
        "bn1_m": 0.1 * jax.random.normal(ks[6], (out_channels,), jnp.float32),
        "bn1_v": 1.0 + 0.1 * jax.random.uniform(ks[7], (out_channels,), jnp.float32),
        # ResBlock.layers[3]: Conv2d(out, out, 3, padding=1) + BatchNorm2d(out)
        "conv2_w": conv_init(ks[8], (out_channels, out_channels, 3, 3), out_channels * 9),
        "conv2_b": conv_init(ks[9], (out_channels,), out_channels * 9),
        "bn2_g": 1.0 + 0.1 * jax.random.normal(ks[10], (out_channels,), jnp.float32),
        "bn2_b": 0.1 * jax.random.normal(ks[11], (out_channels,), jnp.float32),
        "bn2_m": 0.1 * jax.random.normal(ks[12], (out_channels,), jnp.float32),
        "bn2_v": 1.0 + 0.1 * jax.random.uniform(ks[13], (out_channels,), jnp.float32),
        # ResBlock.conv1x1
        "conv1x1_w": conv_init(ks[14], (out_channels, in_channels, 1, 1), in_channels),
        "conv1x1_b": conv_init(ks[15], (out_channels,), in_channels),
    }

    y = upconv_block_forward(x1, x2, params)
    y = jax.block_until_ready(y)

    ref = upconv_block_reference(x1, x2, params)
    assert y.shape == (N, out_channels, H2s, W2s), y.shape
    max_err = float(jnp.max(jnp.abs(y - ref)))
    assert jnp.allclose(y, ref, atol=1e-4, rtol=1e-4), f"max abs err = {max_err}"

    print("KERNEL_OK")
</pallas_src>

<mosaic_0001>
module attributes {stable_mosaic.version = 11 : i64} {
  func.func @_bilinear_up_kernel(%arg0: i32, %arg1: memref<1x4x8x8xf32, #tpu.memory_space<vmem>>, %arg2: memref<16x8xf32, #tpu.memory_space<vmem>>, %arg3: memref<8x16xf32, #tpu.memory_space<vmem>>, %arg4: memref<1x4x16x16xf32, #tpu.memory_space<vmem>>) attributes {dimension_semantics = [#tpu.dimension_semantics<parallel>], iteration_bounds = array<i64: 2>, scalar_prefetch = 0 : i64, scratch_operands = 0 : i64, tpu.core_type = #tpu.core_type<tc>, window_params = [{transform_indices = @transform_0, window_bounds = array<i64: 1, 4, 8, 8>}, {pipeline_mode = #tpu.pipeline_mode<synchronous>, transform_indices = @transform_1, window_bounds = array<i64: 16, 8>}, {pipeline_mode = #tpu.pipeline_mode<synchronous>, transform_indices = @transform_2, window_bounds = array<i64: 8, 16>}, {transform_indices = @transform_3, window_bounds = array<i64: 1, 4, 16, 16>}]} {
    %c0 = arith.constant 0 : index
    %c0_0 = arith.constant 0 : index
    %0 = vector.load %arg2[%c0, %c0_0] : memref<16x8xf32, #tpu.memory_space<vmem>>, vector<16x8xf32>
    %c0_1 = arith.constant 0 : index
    %c0_2 = arith.constant 0 : index
    %1 = vector.load %arg3[%c0_1, %c0_2] : memref<8x16xf32, #tpu.memory_space<vmem>>, vector<8x16xf32>
    %c0_3 = arith.constant 0 : index
    %c0_4 = arith.constant 0 : index
    %c0_5 = arith.constant 0 : index
    %c0_6 = arith.constant 0 : index
    %2 = vector.load %arg1[%c0_3, %c0_4, %c0_5, %c0_6] : memref<1x4x8x8xf32, #tpu.memory_space<vmem>>, vector<1x1x8x8xf32>
    %3 = vector.shape_cast %2 : vector<1x1x8x8xf32> to vector<8x8xf32>
    %cst = arith.constant dense<0.000000e+00> : vector<16x8xf32>
    %4 = tpu.matmul %0, %3, %cst {dimension_numbers = #tpu.dot_dimension_numbers<[1], [0], [0], [1], [0, 0, 1, 1], [], []>} : vector<16x8xf32>, vector<8x8xf32>, vector<16x8xf32> -> vector<16x8xf32>
    %cst_7 = arith.constant dense<0.000000e+00> : vector<16x16xf32>
    %5 = tpu.matmul %4, %1, %cst_7 {dimension_numbers = #tpu.dot_dimension_numbers<[1], [0], [0], [1], [0, 0, 1, 1], [], []>} : vector<16x8xf32>, vector<8x16xf32>, vector<16x16xf32> -> vector<16x16xf32>
    %c0_8 = arith.constant 0 : index
    %c0_9 = arith.constant 0 : index
    %c0_10 = arith.constant 0 : index
    %c0_11 = arith.constant 0 : index
    %6 = vector.load %arg4[%c0_8, %c0_9, %c0_10, %c0_11] : memref<1x4x16x16xf32, #tpu.memory_space<vmem>>, vector<1x1x16x16xf32>
    %7 = vector.shape_cast %6 : vector<1x1x16x16xf32> to vector<16x16xf32>
    %8 = vector.shape_cast %5 : vector<16x16xf32> to vector<1x1x16x16xf32>
    tpu.vector_store %arg4[%c0_8, %c0_9, %c0_10, %c0_11], %8 {strides = array<i32>} : memref<1x4x16x16xf32, #tpu.memory_space<vmem>>, vector<1x1x16x16xf32>,
    %c0_12 = arith.constant 0 : index
    %c1 = arith.constant 1 : index
    %c0_13 = arith.constant 0 : index
    %c0_14 = arith.constant 0 : index
    %9 = vector.load %arg1[%c0_12, %c1, %c0_13, %c0_14] : memref<1x4x8x8xf32, #tpu.memory_space<vmem>>, vector<1x1x8x8xf32>
    %10 = vector.shape_cast %9 : vector<1x1x8x8xf32> to vector<8x8xf32>
    %cst_15 = arith.constant dense<0.000000e+00> : vector<16x8xf32>
    %11 = tpu.matmul %0, %10, %cst_15 {dimension_numbers = #tpu.dot_dimension_numbers<[1], [0], [0], [1], [0, 0, 1, 1], [], []>} : vector<16x8xf32>, vector<8x8xf32>, vector<16x8xf32> -> vector<16x8xf32>
    %cst_16 = arith.constant dense<0.000000e+00> : vector<16x16xf32>
    %12 = tpu.matmul %11, %1, %cst_16 {dimension_numbers = #tpu.dot_dimension_numbers<[1], [0], [0], [1], [0, 0, 1, 1], [], []>} : vector<16x8xf32>, vector<8x16xf32>, vector<16x16xf32> -> vector<16x16xf32>
    %c0_17 = arith.constant 0 : index
    %c1_18 = arith.constant 1 : index
    %c0_19 = arith.constant 0 : index
    %c0_20 = arith.constant 0 : index
    %13 = vector.load %arg4[%c0_17, %c1_18, %c0_19, %c0_20] : memref<1x4x16x16xf32, #tpu.memory_space<vmem>>, vector<1x1x16x16xf32>
    %14 = vector.shape_cast %13 : vector<1x1x16x16xf32> to vector<16x16xf32>
    %15 = vector.shape_cast %12 : vector<16x16xf32> to vector<1x1x16x16xf32>
    tpu.vector_store %arg4[%c0_17, %c1_18, %c0_19, %c0_20], %15 {strides = array<i32>} : memref<1x4x16x16xf32, #tpu.memory_space<vmem>>, vector<1x1x16x16xf32>,
    %c0_21 = arith.constant 0 : index
    %c2 = arith.constant 2 : index
    %c0_22 = arith.constant 0 : index
    %c0_23 = arith.constant 0 : index
    %16 = vector.load %arg1[%c0_21, %c2, %c0_22, %c0_23] : memref<1x4x8x8xf32, #tpu.memory_space<vmem>>, vector<1x1x8x8xf32>
    %17 = vector.shape_cast %16 : vector<1x1x8x8xf32> to vector<8x8xf32>
    %cst_24 = arith.constant dense<0.000000e+00> : vector<16x8xf32>
    %18 = tpu.matmul %0, %17, %cst_24 {dimension_numbers = #tpu.dot_dimension_numbers<[1], [0], [0], [1], [0, 0, 1, 1], [], []>} : vector<16x8xf32>, vector<8x8xf32>, vector<16x8xf32> -> vector<16x8xf32>
    %cst_25 = arith.constant dense<0.000000e+00> : vector<16x16xf32>
    %19 = tpu.matmul %18, %1, %cst_25 {dimension_numbers = #tpu.dot_dimension_numbers<[1], [0], [0], [1], [0, 0, 1, 1], [], []>} : vector<16x8xf32>, vector<8x16xf32>, vector<16x16xf32> -> vector<16x16xf32>
    %c0_26 = arith.constant 0 : index
    %c2_27 = arith.constant 2 : index
    %c0_28 = arith.constant 0 : index
    %c0_29 = arith.constant 0 : index
    %20 = vector.load %arg4[%c0_26, %c2_27, %c0_28, %c0_29] : memref<1x4x16x16xf32, #tpu.memory_space<vmem>>, vector<1x1x16x16xf32>
    %21 = vector.shape_cast %20 : vector<1x1x16x16xf32> to vector<16x16xf32>
    %22 = vector.shape_cast %19 : vector<16x16xf32> to vector<1x1x16x16xf32>
    tpu.vector_store %arg4[%c0_26, %c2_27, %c0_28, %c0_29], %22 {strides = array<i32>} : memref<1x4x16x16xf32, #tpu.memory_space<vmem>>, vector<1x1x16x16xf32>,
    %c0_30 = arith.constant 0 : index
    %c3 = arith.constant 3 : index
    %c0_31 = arith.constant 0 : index
    %c0_32 = arith.constant 0 : index
    %23 = vector.load %arg1[%c0_30, %c3, %c0_31, %c0_32] : memref<1x4x8x8xf32, #tpu.memory_space<vmem>>, vector<1x1x8x8xf32>
    %24 = vector.shape_cast %23 : vector<1x1x8x8xf32> to vector<8x8xf32>
    %cst_33 = arith.constant dense<0.000000e+00> : vector<16x8xf32>
    %25 = tpu.matmul %0, %24, %cst_33 {dimension_numbers = #tpu.dot_dimension_numbers<[1], [0], [0], [1], [0, 0, 1, 1], [], []>} : vector<16x8xf32>, vector<8x8xf32>, vector<16x8xf32> -> vector<16x8xf32>
    %cst_34 = arith.constant dense<0.000000e+00> : vector<16x16xf32>
    %26 = tpu.matmul %25, %1, %cst_34 {dimension_numbers = #tpu.dot_dimension_numbers<[1], [0], [0], [1], [0, 0, 1, 1], [], []>} : vector<16x8xf32>, vector<8x16xf32>, vector<16x16xf32> -> vector<16x16xf32>
    %c0_35 = arith.constant 0 : index
    %c3_36 = arith.constant 3 : index
    %c0_37 = arith.constant 0 : index
    %c0_38 = arith.constant 0 : index
    %27 = vector.load %arg4[%c0_35, %c3_36, %c0_37, %c0_38] : memref<1x4x16x16xf32, #tpu.memory_space<vmem>>, vector<1x1x16x16xf32>
    %28 = vector.shape_cast %27 : vector<1x1x16x16xf32> to vector<16x16xf32>
    %29 = vector.shape_cast %26 : vector<16x16xf32> to vector<1x1x16x16xf32>
    tpu.vector_store %arg4[%c0_35, %c3_36, %c0_37, %c0_38], %29 {strides = array<i32>} : memref<1x4x16x16xf32, #tpu.memory_space<vmem>>, vector<1x1x16x16xf32>,
    return
  }
  func.func @transform_0(%arg0: i32) -> (i32, i32, i32, i32) {
    %c0_i32 = arith.constant 0 : i32
    %c0_i32_0 = arith.constant 0 : i32
    %c0_i32_1 = arith.constant 0 : i32
    %c0_i32_2 = arith.constant 0 : i32
    return %arg0, %c0_i32, %c0_i32_0, %c0_i32_1 : i32, i32, i32, i32
  }
  func.func @transform_1(%arg0: i32) -> (i32, i32) {
    %c0_i32 = arith.constant 0 : i32
    %c0_i32_0 = arith.constant 0 : i32
    %c0_i32_1 = arith.constant 0 : i32
    return %c0_i32, %c0_i32_0 : i32, i32
  }
  func.func @transform_2(%arg0: i32) -> (i32, i32) {
    %c0_i32 = arith.constant 0 : i32
    %c0_i32_0 = arith.constant 0 : i32
    %c0_i32_1 = arith.constant 0 : i32
    return %c0_i32, %c0_i32_0 : i32, i32
  }
  func.func @transform_3(%arg0: i32) -> (i32, i32, i32, i32) {
    %c0_i32 = arith.constant 0 : i32
    %c0_i32_0 = arith.constant 0 : i32
    %c0_i32_1 = arith.constant 0 : i32
    %c0_i32_2 = arith.constant 0 : i32
    return %arg0, %c0_i32, %c0_i32_0, %c0_i32_1 : i32, i32, i32, i32
  }
}

</mosaic_0001>

<bundles_post_ra>
// kernel: tpu_custom_call.1
= control target key start
LH: loop header
LB: loop body
LE: loop exit
PB: predicated region body
PF: predicated region fallthrough
CT: control target
= control target key end

     0   :  { %8 = vsyncpa [#allocation3], 0  ;;  %s1404_s0 = inlined_call_operand.hbm [shape: f32[2,4,8,8], index: 0, kind: input, shape index: {}]   ;;  %s1405_s1 = inlined_call_operand.vmem [shape: f32[16,8], index: 1, kind: input, shape index: {}]   ;;  %s1406_s2 = inlined_call_operand.vmem [shape: f32[8,16], index: 2, kind: input, shape index: {}]   ;;  %s1407_s3 = inlined_call_operand.hbm [shape: f32[2,4,16,16], index: 3, kind: output, shape index: {}]  }
   0x1   :  { %10 = vsyncpa [#allocation3 + $0x1], 0 }
   0x2   :  { %11 = vsyncpa [#allocation4], 0 }
   0x3   :  { %13 = vsyncpa [#allocation4 + $0x1], 0  ;;  %s1208_s12 = smov 0   ;;  %s1210_s13 = smov 0  }
   0x4   :  { %s1212_s14 = smov 0   ;;  %s1214_s15 = smov 0  }
   0x5 LB: > { %s1229_s16 = sadd.s32 4294967295, %s1180_s15   ;;  %s929_s17 = sadd.s32 4294967294, %s1180_s15   ;;  %s1180_s15 = sphi %s1214_s15, %s1420_s15   ;;  %s1176_s14 = sphi %s1212_s14, %s1419_s14   ;;  %s1172_s13 = sphi %s1210_s13, %s1418_s13   ;;  %s1168_s12 = sphi %s1208_s12, %s1417_s12  }
   0x6   : > { %s1233_s18 = sadd.s32 1, %s1180_s15   ;;  %s26_s19 = sadd.s32 1, %s1176_s14 }
   0x7   : > { %s23_s20 = ssub.s32 %s1180_s15, %s1233_s18  ;;  %p33_p0 = scmp.ne.s32.totalorder %s1176_s14, %s1172_s13 }
   0x8   : > { %p24_p1 = scmp.eq.s32.totalorder %s23_s20, 0  ;;  %p34_p2 = scmp.eq.s32.totalorder %s1180_s15, 0 }
   0x9   : > { %p39_p3 = scmp.ne.s32.totalorder %s1172_s13, %s1168_s12  ;;  %p40_p4 = scmp.eq.s32.totalorder %s1229_s16, 0 }
   0xa   : > { %s1245_s21 = scalar_select %p24_p1, %s1176_s14, %s26_s19  }
   0xb   : > { %p1247_p5 = por %p34_p2, %p33_p0  ;;  %p1251_p6 = por %p40_p4, %p39_p3 }
   0xc   : > { %p105_p7 = scmp.eq.s32.totalorder %s1229_s16, 1  ;;  %p111_p8 = scmp.eq.s32.totalorder %s929_s17, 1 }
   0xd   : > { %p1046_p10 = scmp.lt.s32.totalorder %s1180_s15, 2  ;;  %s137_s26 = sand.u32 1, %s1176_s14  }
   0xe   : > { %p1258_p11 = por %p105_p7, %p33_p0  ;;  %p1262_p12 = por %p111_p8, %p39_p3 }
   0xf   : > { %s968_s27 = sshll.u32 %s1180_s15, 9  ;;  %s932_s28 = sshll.u32 %s137_s26, 5 }
  0x10   : > { %s1411_s24 = scalar_select %p1258_p11, 1, 0 }
  0x11   : > { %s1412_s25 = scalar_select %p1262_p12, 1, 0 }
  0x12   : > { %s1271_s4 = scalar_lea.hbm %s1404_s0, %s968_s27  ;;  %s141_s5 = scalar_lea.vmem [#allocation2], %s932_s28 }
  0x13   : > { %s148_s6 = sshll.u32 %s141_s5, 4  ;;  %p1275_p13 = pnand %p1046_p10, %p1247_p5  ;;  %s1279_s6 = int_to_ptr.vmem [resolvable:$true] %s148_s6 }
  0x14   : > { %s1281_s8 = scalar_lea.sflag [#allocation3], %s137_s26  ;;  %s1084_s9 = scalar_lea.hbm %s1271_s4, 512 }
  0x15   : > { %p1085_p0 = scmp.ne.s32.totalorder %s1271_s4, %s1084_s9  ;;  %p1086_p1 = pneg %p1275_p13 }
  0x16   : > { %s1089_s17 = scalar_lea.hbm %s1404_s0, 1024  ;;  %p1090_p4 = scmp.lt.u32.totalorder %s1271_s4, %s1404_s0 }
  0x17   : > { %p1087_p2 = pnand %p1086_p1, %p1085_p0  ;;  %p1091_p5 = scmp.lt.u32.totalorder %s1089_s17, %s1084_s9 }
  0x18   : > { %p1093_p8 = scmp.lt.u32.totalorder %s1084_s9, %s1271_s4 }
  0x19   : > { %p1088_p3 = pneg %p1087_p2  ;;  %p1092_p7 = por %p1091_p5, %p1090_p4 }
  0x1b   : > { %p1094_p10 = por %p1093_p8, %p1092_p7 }
  0x1d   : > { %p1095_p9 = pnand %p1094_p10, %p1088_p3 }
  0x1f   : > { %1098 = shalt.err (!%p1095_p9)
}
  0x20   : > { %s1099_s22 = scalar_lea.vmem %s1279_s6, 512  ;;  %s1182_s26 = smov [#allocation2]  }
  0x21   : > { %p1100_p0 = scmp.ne.s32.totalorder %s1279_s6, %s1099_s22  ;;  %s1104_s27 = sshll.u32 %s1182_s26, 4  ;;  %s1105_s27 = int_to_ptr.vmem [resolvable:$false] %s1104_s27 }
  0x22   : > { %s1106_s28 = scalar_lea.vmem %s1105_s27, 1024  ;;  %p1107_p11 = scmp.lt.s32.totalorder %s1279_s6, %s1105_s27 }
  0x23   : > { %p1102_p2 = pnand %p1100_p0, %p1086_p1  ;;  %p1108_p4 = scmp.lt.s32.totalorder %s1106_s28, %s1099_s22 }
  0x25   : > { %p1103_p12 = pneg %p1102_p2  ;;  %p1109_p5 = por %p1108_p4, %p1107_p11 }
  0x27   : > { %p1110_p7 = pnand %p1109_p5, %p1103_p12 }
  0x29   : > { %1113 = shalt.err (!%p1110_p7)
}
  0x2a   : > { %s1183_s29 = smov 128   ;;  %s1184_s30 = smov 8  }
  0x2b   : > { %1041 = dma.hbm_to_vmem [thread:$0]  (!%p1275_p13), %s1271_s4, 512, %s1279_s6, %s1281_s8, %s1183_s29, %s1183_s29, %s1184_s30  }
  0x2c   : > { %p935_p9 = scmp.ge.s32.totalorder %s1180_s15, 1  ;;  %p156_p1 = scmp.lt.s32.totalorder %s1180_s15, 3 }
  0x2e   : > { %p157_p3 = pnand %p935_p9, %p156_p1 }
  0x2f   : > { %s1312_s5 = sand.u32 (!%p157_p3), 1, %s1172_s13  }
  0x30   : > { %160 = sbr.rel (%p157_p3) target bundleno = 513 (0x201), region = 32  ;;  %s936_s9 = sshll.u32 (!%p157_p3), %s1312_s5, 5 }
  0x31   : > { %s163_s10 = scalar_lea.sflag (!%p157_p3), [#allocation3], %s1312_s5  ;;  %s166_s11 = scalar_lea.vmem (!%p157_p3), [#allocation2], %s936_s9 }
  0x37   : > { %1159 = dma.done.wait (%p1251_p6), %s163_s10, 512  }
  0x38   : > { %1161 = vsyncadd (%p1251_p6), %s163_s10, 4294966784  ;;  %vm193_vm0 = vcmask 64512   ;;  %v192_v0 = vld [vmem:[%s166_s11] sm:$0xff]  ;;  %v190_v2 = vld [vmem:[%s1405_s1 + $0x8] sm:$0xff]  ;;  %s937_s19 = sshll.u32 %s1312_s5, 6  ;;  %vm356_vm1 = vcmask 130048  }
  0x39   : > { %v189_v1 = vld [vmem:[%s1405_s1] sm:$0xff]  ;;  %994 = vmatprep.subr.mxu0 %v192_v0  ;;  %v942_v3 = vld [vmem:[%s166_s11 + $0x8] sm:$0xff]  ;;  %v949_v4 = vld [vmem:[%s166_s11 + $0x10] sm:$0xff]  ;;  %s188_s20 = scalar_lea.vmem [#allocation5], %s937_s19  ;;  %s969_s26 = sshll.u32 %s1229_s16, 10 }
  0x3a   : > { %996 = vmatprep.mubr.msk.f32.mxu0 %vm193_vm0, %v189_v1  ;;  %995 = vmatpush3.msra.mxu0 %v192_v0  ;;  %v956_v5 = vld [vmem:[%s166_s11 + $0x18] sm:$0xff]  ;;  %v191_v6 = vld [vmem:[%s1406_s2] sm:$0xff]  ;;  %s856_s22 = sshll.u32 %s188_s20, 4  ;;  %s1358_s29 = scalar_lea.hbm %s1407_s3, %s969_s26  ;;  %s1352_s22 = int_to_ptr.vmem [resolvable:$true] %s856_s22 }
  0x3b   : > { %997 = vmatmul.mubr.msk.f32.vlgmr.msra.gmra.mrb[0].mxu0 %vm193_vm0, %v190_v2  ;;  %1004 = vmatprep.subr.mxu0 %v942_v3  ;;  %s843_s16 = scalar_lea.sflag [#allocation4], %s1312_s5  ;;  %s1114_s30 = scalar_lea.vmem %s1352_s22, 1024 }
  0x3c   : > { %1005 = vmatpush3.msra.mxu0 %v942_v3  ;;  %1006 = vmatprep.mubr.msk.f32.mxu0 %vm193_vm0, %v189_v1  ;;  %p1115_p6 = scmp.ne.s32.totalorder %s1352_s22, %s1114_s30  ;;  %p1414_p11 = scmp.ne.s32.totalorder %s1411_s24, 0 }
  0x3d   : > { %1014 = vmatprep.subr.mxu0 %v949_v4  ;;  %999 = vmatprep.subr.mxu1 %v191_v6  ;;  %s1185_s9 = smov [#allocation5]  }
  0x3e   : > { %1000 = vmatpush3.msra.mxu1 %v191_v6  ;;  %p1116_p12 = pnand %p1115_p6, %p1414_p11  ;;  %s1118_s10 = sshll.u32 %s1185_s9, 4  ;;  %s1119_s10 = int_to_ptr.vmem [resolvable:$false] %s1118_s10 }
  0x3f   : > { %1007 = vmatmul.mubr.msk.f32.vlgmr.msra.gmra.mrb[2].mxu0 %vm193_vm0, %v190_v2  ;;  %1009 = vmatprep.subr.mxu1 %v191_v6  ;;  %s1120_s11 = scalar_lea.vmem %s1119_s10, 2048  ;;  %p1121_p8 = scmp.lt.s32.totalorder %s1352_s22, %s1119_s10 }
  0x40   : > { %1015 = vmatpush3.msra.mxu0 %v949_v4  ;;  %1016 = vmatprep.mubr.msk.f32.mxu0 %vm193_vm0, %v189_v1  ;;  %p1117_p13 = pneg %p1116_p12  ;;  %p1122_p10 = scmp.lt.s32.totalorder %s1120_s11, %s1114_s30 }
  0x41   : > { %1024 = vmatprep.subr.mxu0 %v956_v5 }
  0x42   : > { %p1123_p0 = por %p1122_p10, %p1121_p8 }
  0x43   : > { %1017 = vmatmul.mubr.msk.f32.vlgmr.msra.gmra.mrb[4].mxu0 %vm193_vm0, %v190_v2 }
  0x44   : > { %1025 = vmatpush3.msra.mxu0 %v956_v5  ;;  %1026 = vmatprep.mubr.msk.f32.mxu0 %vm193_vm0, %v189_v1  ;;  %p1124_p2 = pnand %p1123_p0, %p1117_p13 }
  0x47   : > { %1027 = vmatmul.mubr.msk.f32.vlgmr.msra.gmra.mrb[6].mxu0 %vm193_vm0, %v190_v2 }
 0x10e   : > { %v998_v7 = vpop.f32.mrb[0].mxu0 }
 0x10f   : > { %v266_v8 = vpop.f32.mrb[1].mxu0 }
 0x110   : > { %1001 = vmatprep.mubr.msk.f32.mxu1 %vm193_vm0, %v266_v8 }
 0x111   : > { %1002 = vmatmul.mubr.msk.f32.vlgmr.msra.gmra.mrb[0].mxu1 %vm193_vm0, %v998_v7 }
 0x112   : > { %v1008_v9 = vpop.f32.mrb[2].mxu0  ;;  %1010 = vmatpush3.msra.mxu1 %v191_v6 }
 0x113   : > { %v427_v10 = vpop.f32.mrb[3].mxu0  ;;  %1019 = vmatprep.subr.mxu1 %v191_v6 }
 0x114   : > { %1011 = vmatprep.mubr.msk.f32.mxu1 %vm193_vm0, %v427_v10 }
 0x115   : > { %1012 = vmatmul.mubr.msk.f32.vlgmr.msra.gmra.mrb[2].mxu1 %vm193_vm0, %v1008_v9 }
 0x116   : > { %v1018_v11 = vpop.f32.mrb[4].mxu0  ;;  %1020 = vmatpush3.msra.mxu1 %v191_v6 }
 0x117   : > { %v588_v12 = vpop.f32.mrb[5].mxu0  ;;  %1029 = vmatprep.subr.mxu1 %v191_v6 }
 0x118   : > { %1021 = vmatprep.mubr.msk.f32.mxu1 %vm193_vm0, %v588_v12 }
 0x119   : > { %1022 = vmatmul.mubr.msk.f32.vlgmr.msra.gmra.mrb[4].mxu1 %vm193_vm0, %v1018_v11 }
 0x11a   : > { %v1028_v13 = vpop.f32.mrb[6].mxu0  ;;  %1030 = vmatpush3.msra.mxu1 %v191_v6 }
 0x11b   : > { %v749_v14 = vpop.f32.mrb[7].mxu0 }
 0x11c   : > { %1031 = vmatprep.mubr.msk.f32.mxu1 %vm193_vm0, %v749_v14 }
 0x11d   : > { %1032 = vmatmul.mubr.msk.f32.vlgmr.msra.gmra.mrb[6].mxu1 %vm193_vm0, %v1028_v13 }
 0x1e4   : > { %v1003_v15 = vpop.f32.mrb[0].mxu1 }
 0x1e5   : > { %358 = vst.msk [vmem:[%s188_s20 + $0x8] sm:$0xff] %vm356_vm1, %v1003_v15  ;;  %v347_v16 = vpop.f32.mrb[1].mxu1 }
 0x1e6   : > { %357 = vst.msk [vmem:[%s188_s20] sm:$0xff] %vm356_vm1, %v347_v16 }
 0x1e8   : > { %v1013_v17 = vpop.f32.mrb[2].mxu1 }
 0x1e9   : > { %948 = vst.msk [vmem:[%s188_s20 + $0x18] sm:$0xff] %vm356_vm1, %v1013_v17  ;;  %v508_v18 = vpop.f32.mrb[3].mxu1 }
 0x1ea   : > { %947 = vst.msk [vmem:[%s188_s20 + $0x10] sm:$0xff] %vm356_vm1, %v508_v18 }
 0x1ec   : > { %v1023_v19 = vpop.f32.mrb[4].mxu1 }
 0x1ed   : > { %955 = vst.msk [vmem:[%s188_s20 + $0x28] sm:$0xff] %vm356_vm1, %v1023_v19  ;;  %v669_v20 = vpop.f32.mrb[5].mxu1 }
 0x1ee   : > { %954 = vst.msk [vmem:[%s188_s20 + $0x20] sm:$0xff] %vm356_vm1, %v669_v20 }
 0x1f0   : > { %v1033_v21 = vpop.f32.mrb[6].mxu1 }
 0x1f1   : > { %962 = vst.msk [vmem:[%s188_s20 + $0x38] sm:$0xff] %vm356_vm1, %v1033_v21  ;;  %v830_v22 = vpop.f32.mrb[7].mxu1 }
 0x1f2   : > { %961 = vst.msk [vmem:[%s188_s20 + $0x30] sm:$0xff] %vm356_vm1, %v830_v22 }
 0x1f3   : > { %1127 = shalt.err (!%p1124_p2)
}
 0x1f4   : > { %s1128_s4 = scalar_lea.hbm %s1358_s29, 1024  ;;  %s1132_s8 = scalar_lea.hbm %s1407_s3, 2048 }
 0x1f5   : > { %p1129_p4 = scmp.ne.s32.totalorder %s1358_s29, %s1128_s4  ;;  %p1133_p9 = scmp.lt.u32.totalorder %s1358_s29, %s1407_s3 }
 0x1f6   : > { %p1134_p1 = scmp.lt.u32.totalorder %s1132_s8, %s1128_s4  ;;  %p1136_p6 = scmp.lt.u32.totalorder %s1128_s4, %s1358_s29 }
 0x1f7   : > { %p1130_p5 = pnand %p1129_p4, %p1414_p11 }
 0x1f8   : > { %p1135_p3 = por %p1134_p1, %p1133_p9 }
 0x1f9   : > { %p1131_p7 = pneg %p1130_p5 }
 0x1fa   : > { %p1137_p12 = por %p1136_p6, %p1135_p3 }
 0x1fc   : > { %p1138_p13 = pnand %p1137_p12, %p1131_p7 }
 0x1fe   : > { %1141 = shalt.err (!%p1138_p13)
}
 0x1ff   : > { %s1186_s19 = smov 128   ;;  %s1187_s20 = smov 8  }
 0x200   : > { %1036 = dma.vmem_to_hbm [thread:$0]  (%p1414_p11), %s1352_s22, 1024, %s1358_s29, %s843_s16, %s1186_s19, %s1186_s19, %s1187_s20  }
 0x201 PF: > { %s871_s26 = sand.u32 1, %s1168_s12   ;;  %p1415_p8 = scmp.ne.s32.totalorder %s1412_s25, 0 }
 0x202   : > { %p1416_p10 = scmp.ge.s32.totalorder %s1180_s15, 2  ;;  %s872_s27 = scalar_lea.sflag [#allocation4], %s871_s26 }
 0x204   : > { %p1043_p0 = pnand %p1416_p10, %p1415_p8 }
 0x206   : > { %1163 = dma.done.wait (!%p1043_p0), %s872_s27, 1024  }
 0x207   : > { %1165 = vsyncadd (!%p1043_p0), %s872_s27, 4294966272  ;;  %p16_p2 = scmp.ge.s32.totalorder %s1233_s18, 4   ;;  %s1417_s12 = smov %s1172_s13 }
 0x208   : > { %s1418_s13 = smov %s1176_s14  ;;  %s1419_s14 = smov %s1245_s21 }
 0x209   : > { %s1420_s15 = smov %s1233_s18  ;;  %18 = sbr.rel (!%p16_p2) target bundleno = 5 (0x5), region = 83 }
 0x210   :  { %877 = vsyncpa [#allocation3], 1 }
 0x211   :  { %879 = vsyncpa [#allocation3 + $0x1], 1 }
 0x212   :  { %880 = vsyncpa [#allocation4], 1 }
 0x213   :  { %882 = vsyncpa [#allocation4 + $0x1], 1 }

</bundles_post_ra>
